<compile_context>
chip_gen: v6e
topology: v6e:2x2x1
jax: 0.10.0
libtpu: 0.0.40
codegen_flags: <defaults>
</compile_context>

<pallas_src>
import functools

import jax
import jax.numpy as jnp
from jax import lax
from jax.experimental import pallas as pl
from jax.experimental.pallas import tpu as pltpu


# ----------------------------------------------------------------------------
# Kernel 1: abs + MaxPool1d(kernel_size=block_size), tiled over time blocks.
# ----------------------------------------------------------------------------
def _pool_kernel(x_ref, o_ref):
    # x_ref: (bs, T1, block_size) -> o_ref: (bs, T1)   (lane-axis reduce)
    o_ref[...] = jnp.max(jnp.abs(x_ref[...]), axis=-1)


def abs_maxpool(x3, budget_bytes=8 << 20):
    """x3: (bs, nsteps, block_size) f32 -> (bs, nsteps) f32 envelope."""
    bs, nsteps, blk = x3.shape
    # tile size from a VMEM budget (2 buffers of (bs, t1, blk) f32); big tiles
    # amortize the ~0.35 us/grid-step overhead (matters most on v5e HBM).
    t1_fit = budget_bytes // (2 * bs * blk * 4)
    t1_fit = max(128, (t1_fit // 128) * 128)
    t1 = nsteps if nsteps <= t1_fit else min(2048, t1_fit)
    grid = (-(-nsteps // t1),)
    return pl.pallas_call(
        _pool_kernel,
        out_shape=jax.ShapeDtypeStruct((bs, nsteps), jnp.float32),
        grid_spec=pltpu.PrefetchScalarGridSpec(
            num_scalar_prefetch=0,
            grid=grid,
            in_specs=[pl.BlockSpec((bs, t1, blk), lambda c: (0, c, 0))],
            out_specs=pl.BlockSpec((bs, t1), lambda c: (0, c)),
        ),
        compiler_params=pltpu.CompilerParams(
            dimension_semantics=("parallel",),
            vmem_limit_bytes=32 << 20),
    )(x3)


# ----------------------------------------------------------------------------
# Kernel 2: chunked LSTM recurrence fused with sigmoid + repeat_interleave.
# ----------------------------------------------------------------------------
def _mac(v, w_t):
    """(bs, D) x (D, G) -> (bs, G); tree-reduced VPU broadcast-MAC for D<=64."""
    d = w_t.shape[0]
    if d > 64:
        # large hidden sizes: let the MXU do it
        return jnp.dot(v, w_t, preferred_element_type=jnp.float32)
    parts = [v[:, k:k + 1] * w_t[k:k + 1, :] for k in range(d)]
    # balanced tree: depth ceil(log2 D) instead of D-1 serial adds
    while len(parts) > 1:
        nxt = [parts[i] + parts[i + 1] for i in range(0, len(parts) - 1, 2)]
        if len(parts) % 2 == 1:
            nxt.append(parts[-1])
        parts = nxt
    return parts[0]


def _lstm_expand_kernel(xd_ref, *rest, num_layers):
    # rest = [row0, b0, whh0_t] + [wih_t, whh_t, bias for l in 1..L-1]
    #        + [o_ref, h_sc, c_sc]
    n_w = 3 + 3 * (num_layers - 1)
    o_ref = rest[n_w]
    h_sc = rest[n_w + 1]
    c_sc = rest[n_w + 2]

    row0 = rest[0][...]                     # (1, 4H) layer-0 input weights^T
    b0 = rest[1][...]                       # (1, 4H) layer-0 combined bias
    whh_t = [rest[2][...]]                  # (H, 4H) layer-0 recurrent weights
    wih_t = [None]
    bias = [None]
    for l in range(1, num_layers):
        base = 3 + 3 * (l - 1)
        wih_t.append(rest[base + 0][...])
        whh_t.append(rest[base + 1][...])
        bias.append(rest[base + 2][...])

    H = whh_t[0].shape[0]
    Tc = xd_ref.shape[0]                    # chunk timesteps
    bg = xd_ref.shape[2]                    # batch rows in this batch group
    blk = o_ref.shape[-1]                   # block_size

    # zero the recurrent state at the first chunk of each batch group
    @pl.when(pl.program_id(1) == 0)
    def _():
        h_sc[...] = jnp.zeros_like(h_sc)
        c_sc[...] = jnp.zeros_like(c_sc)

    states0 = tuple((h_sc[l], c_sc[l]) for l in range(num_layers))

    def step(t, states):
        x_t = xd_ref[t, 0]                          # (bg, 1) pooled envelope
        # layer-0 input projection: input size is 1 -> single broadcast-MAC
        gates0 = x_t * row0 + b0                    # (bg, 4H)
        new_states = []
        x_in = None
        for l in range(num_layers):
            h, c = states[l]
            gates = gates0 if l == 0 else bias[l] + _mac(x_in, wih_t[l])
            gates = gates + _mac(h, whh_t[l])       # VPU recurrent MAC
            # fused nonlinearities: 2 EUP calls on the full (bg, 4H) vector
            sig = jax.nn.sigmoid(gates)
            tnh = jnp.tanh(gates)
            i_g = sig[:, 0:H]
            f_g = sig[:, H:2 * H]
            o_g = sig[:, 3 * H:4 * H]
            g_g = tnh[:, 2 * H:3 * H]
            c_new = f_g * c + i_g * g_g
            h_new = o_g * jnp.tanh(c_new)
            new_states.append((h_new, c_new))
            x_in = h_new
        # fused sigmoid + repeat_interleave(block_size): one direct per-step
        # store of a lane-dense (bg, H, 1, blk) slice; no where-scatter, no
        # end-of-chunk slab broadcast.
        cp = jax.nn.sigmoid(x_in)                   # (bg, H)
        o_ref[:, :, pl.ds(t, 1), :] = jnp.broadcast_to(
            cp[:, :, None, None], (bg, H, 1, blk))
        return tuple(new_states)

    unroll = 4 if Tc >= 4 else 1
    states = lax.fori_loop(0, Tc, step, states0, unroll=unroll)

    for l in range(num_layers):
        h_sc[l] = states[l][0]
        c_sc[l] = states[l][1]


def _choose_tc(nsteps, bg, H, blk, target, budget_bytes=16 << 20):
    """Chunk length from a per-generation-safe VMEM budget (fits v7x 64 MiB)."""
    # double-buffered output slab + double-buffered padded envelope block
    per_step = 2 * (bg * H * blk * 4) + 2 * 4096
    tc_fit = max(8, int(budget_bytes // per_step))
    tc = min(int(target), tc_fit)
    if tc >= nsteps:
        return nsteps
    return max(8, (tc // 8) * 8)


def lstm_sigmoid_expand(xdT, lstm_params, block_size, tc, num_chunks,
                        batch_groups):
    """xdT: (nsteps_pad, bs, 1) pooled envelope (zero-padded to num_chunks*tc)."""
    nsteps_pad, bs, _ = xdT.shape
    bg = bs // batch_groups
    num_layers = len(lstm_params)
    w_ih0, w_hh0, b_ih0, b_hh0 = lstm_params[0]
    G = w_ih0.shape[0]
    H = G // 4

    # group the batch so each grid point sees its own (tc, 1, bg, 1) block
    xdG = xdT.reshape(nsteps_pad, batch_groups, bg, 1)

    const2 = lambda b, c: (0, 0)
    kin = [xdG]
    in_specs = [pl.BlockSpec((tc, 1, bg, 1), lambda b, c: (c, b, 0, 0))]

    # layer 0: input weights row (input size 1), combined bias, recurrent wts
    kin.append(jnp.transpose(w_ih0).astype(jnp.float32))              # (1, G)
    in_specs.append(pl.BlockSpec((1, G), const2))
    kin.append((b_ih0 + b_hh0).reshape(1, G).astype(jnp.float32))     # (1, G)
    in_specs.append(pl.BlockSpec((1, G), const2))
    kin.append(jnp.transpose(w_hh0).astype(jnp.float32))              # (H, G)
    in_specs.append(pl.BlockSpec((H, G), const2))
    # deeper layers: input proj, recurrent proj, combined bias
    for l in range(1, num_layers):
        w_ih, w_hh, b_ih, b_hh = lstm_params[l]
        kin += [jnp.transpose(w_ih).astype(jnp.float32),
                jnp.transpose(w_hh).astype(jnp.float32),
                (b_ih + b_hh).reshape(1, G).astype(jnp.float32)]
        in_specs += [pl.BlockSpec((H, G), const2),
                     pl.BlockSpec((H, G), const2),
                     pl.BlockSpec((1, G), const2)]

    kernel = functools.partial(_lstm_expand_kernel, num_layers=num_layers)
    return pl.pallas_call(
        kernel,
        out_shape=jax.ShapeDtypeStruct(
            (bs, H, nsteps_pad, block_size), jnp.float32),
        grid_spec=pltpu.PrefetchScalarGridSpec(
            num_scalar_prefetch=0,
            grid=(batch_groups, num_chunks),
            in_specs=in_specs,
            out_specs=pl.BlockSpec((bg, H, tc, block_size),
                                   lambda b, c: (b, 0, c, 0)),
            scratch_shapes=[
                pltpu.VMEM((num_layers, bg, H), jnp.float32),   # h state
                pltpu.VMEM((num_layers, bg, H), jnp.float32),   # c state
            ],
        ),
        compiler_params=pltpu.CompilerParams(
            dimension_semantics=("parallel", "arbitrary"),
            vmem_limit_bytes=32 << 20),
    )(*kin)


# ----------------------------------------------------------------------------
# Wrapper: full DynamicController.forward
# ----------------------------------------------------------------------------
def dynamic_controller_forward(x, lstm_params, block_size,
                               max_chunk_steps=512, batch_groups=1):
    bs, chs, seq_len = x.shape
    assert chs == 1
    assert bs % batch_groups == 0
    bg = bs // batch_groups
    H = lstm_params[0][1].shape[1]          # w_hh: (4H, H)
    G = 4 * H
    assert lstm_params[0][0].shape == (G, 1)

    nsteps = -(-seq_len // block_size)
    padded_len = nsteps * block_size

    # pad only the ragged tail block (no-op & elided when already aligned)
    x2 = x.reshape(bs, seq_len).astype(jnp.float32)
    if padded_len != seq_len:
        x2 = jnp.pad(x2, ((0, 0), (0, padded_len - seq_len)))
    x3 = x2.reshape(bs, nsteps, block_size)          # free contiguous reshape

    # Kernel 1: abs + max-pool (reads x once)
    xd = abs_maxpool(x3)                             # (bs, nsteps)

    # chunking derived from a VMEM budget (safe for v7x's 64 MiB)
    tc = _choose_tc(nsteps, bg, H, block_size, max_chunk_steps)
    num_chunks = -(-nsteps // tc)
    nsteps_pad = num_chunks * tc

    # tiny envelope, seq-first; explicit zero padding so ragged final chunks
    # never read unspecified edge-block data
    xdT = jnp.transpose(xd)[:, :, None]              # (nsteps, bs, 1)
    if nsteps_pad != nsteps:
        xdT = jnp.pad(xdT, ((0, nsteps_pad - nsteps), (0, 0), (0, 0)))

    # Kernel 2: chunked LSTM + sigmoid + repeat_interleave (writes output once)
    out4 = lstm_sigmoid_expand(xdT, lstm_params, block_size,
                               tc, num_chunks, batch_groups)

    out = out4.reshape(bs, H, nsteps_pad * block_size)   # contiguous -> free
    return out[..., :seq_len]


# ----------------------------------------------------------------------------
# Deterministic parameter init (PyTorch LSTM default: U(-1/sqrt(H), 1/sqrt(H)))
# ----------------------------------------------------------------------------
def init_lstm_params(key, hidden, num_layers):
    params = []
    bound = 1.0 / float(hidden) ** 0.5
    in_dim = 1
    for _ in range(num_layers):
        key, k1, k2, k3, k4 = jax.random.split(key, 5)
        w_ih = jax.random.uniform(k1, (4 * hidden, in_dim), jnp.float32,
                                  -bound, bound)
        w_hh = jax.random.uniform(k2, (4 * hidden, hidden), jnp.float32,
                                  -bound, bound)
        b_ih = jax.random.uniform(k3, (4 * hidden,), jnp.float32, -bound, bound)
        b_hh = jax.random.uniform(k4, (4 * hidden,), jnp.float32, -bound, bound)
        params.append((w_ih, w_hh, b_ih, b_hh))
        in_dim = hidden
    return params


# ----------------------------------------------------------------------------
# Pure-JAX reference (mirrors the PyTorch forward) for verification
# ----------------------------------------------------------------------------
def reference_forward(x, lstm_params, block_size):
    bs, chs, seq_len = x.shape
    pad = (-seq_len) % block_size
    xp = jnp.pad(x, ((0, 0), (0, 0), (0, pad)))
    nsteps = xp.shape[-1] // block_size
    x_down = jnp.max(jnp.abs(xp.reshape(bs, 1, nsteps, block_size)), axis=-1)
    seq = jnp.transpose(x_down, (2, 0, 1))             # (nsteps, bs, 1)
    for (w_ih, w_hh, b_ih, b_hh) in lstm_params:
        H = w_hh.shape[1]

        def step(carry, x_t, w_ih=w_ih, w_hh=w_hh, b_ih=b_ih, b_hh=b_hh, H=H):
            h, c = carry
            gates = x_t @ w_ih.T + h @ w_hh.T + b_ih + b_hh
            i = jax.nn.sigmoid(gates[:, :H])
            f = jax.nn.sigmoid(gates[:, H:2 * H])
            g = jnp.tanh(gates[:, 2 * H:3 * H])
            o = jax.nn.sigmoid(gates[:, 3 * H:])
            c = f * c + i * g
            h = o * jnp.tanh(c)
            return (h, c), h

        init = (jnp.zeros((bs, H), jnp.float32), jnp.zeros((bs, H), jnp.float32))
        _, seq = jax.lax.scan(step, init, seq)
    cp = jax.nn.sigmoid(jnp.transpose(seq, (1, 2, 0)))  # (bs, P, nsteps)
    cp = jnp.repeat(cp, block_size, axis=-1)
    return cp[..., :seq_len]


if __name__ == "__main__":
    key = jax.random.PRNGKey(0)
    k_x, k_p, k_x2 = jax.random.split(key, 3)

    # Config A: 1 layer; seq_len not a multiple of block_size; default
    # budget-derived chunking (single chunk at this size).
    bs, P, block_size, seq_len = 2, 4, 128, 5000
    x = jax.random.normal(k_x, (bs, 1, seq_len), jnp.float32)
    params = init_lstm_params(k_p, P, 1)
    ref = reference_forward(x, params, block_size)

    out = jax.block_until_ready(
        dynamic_controller_forward(x, params, block_size))
    assert out.shape == (bs, P, seq_len), out.shape
    assert jnp.allclose(out, ref, atol=5e-5, rtol=5e-5), float(
        jnp.max(jnp.abs(out - ref)))

    # Config A2: forced small chunks -> multiple sequential chunks incl. a
    # ragged final chunk (exercises h/c carry across grid steps + edge pad).
    out2 = jax.block_until_ready(
        dynamic_controller_forward(x, params, block_size, max_chunk_steps=16))
    assert jnp.allclose(out2, ref, atol=5e-5, rtol=5e-5), float(
        jnp.max(jnp.abs(out2 - ref)))

    # Config A3: batch split over a leading "parallel" grid axis
    # (v7x-style two-TensorCore sharding; runs serially on 1-TC chips).
    out3 = jax.block_until_ready(
        dynamic_controller_forward(x, params, block_size, max_chunk_steps=16,
                                   batch_groups=2))
    assert jnp.allclose(out3, ref, atol=5e-5, rtol=5e-5), float(
        jnp.max(jnp.abs(out3 - ref)))

    # Config B: 2 stacked LSTM layers, single chunk.
    seq_len_b = 1000
    xb = jax.random.normal(k_x2, (bs, 1, seq_len_b), jnp.float32)
    params_b = init_lstm_params(k_p, P, 2)
    out_b = jax.block_until_ready(
        dynamic_controller_forward(xb, params_b, block_size))
    assert out_b.shape == (bs, P, seq_len_b), out_b.shape
    ref_b = reference_forward(xb, params_b, block_size)
    assert jnp.allclose(out_b, ref_b, atol=5e-5, rtol=5e-5), float(
        jnp.max(jnp.abs(out_b - ref_b)))

    print("KERNEL_OK")
</pallas_src>

<mosaic_0001>
module attributes {stable_mosaic.version = 11 : i64} {
  func.func @_pool_kernel(%arg0: i32, %arg1: memref<2x40x128xf32, #tpu.memory_space<vmem>>, %arg2: memref<2x40xf32, #tpu.memory_space<vmem>>) attributes {dimension_semantics = [#tpu.dimension_semantics<parallel>], iteration_bounds = array<i64: 1>, scalar_prefetch = 0 : i64, scratch_operands = 0 : i64, tpu.core_type = #tpu.core_type<tc>, window_params = [{transform_indices = @transform_0, window_bounds = array<i64: 2, 40, 128>}, {transform_indices = @transform_1, window_bounds = array<i64: 2, 40>}]} {
    %c0 = arith.constant 0 : index
    %c0_0 = arith.constant 0 : index
    %c0_1 = arith.constant 0 : index
    %0 = vector.load %arg1[%c0, %c0_0, %c0_1] : memref<2x40x128xf32, #tpu.memory_space<vmem>>, vector<2x40x128xf32>
    %1 = math.absf %0 : vector<2x40x128xf32>
    %cst = arith.constant dense<0xFF800000> : vector<2x40xf32>
    %2 = vector.multi_reduction <maximumf>, %1, %cst [2] : vector<2x40x128xf32> to vector<2x40xf32>
    %c0_2 = arith.constant 0 : index
    %c0_3 = arith.constant 0 : index
    %3 = vector.load %arg2[%c0_2, %c0_3] : memref<2x40xf32, #tpu.memory_space<vmem>>, vector<2x40xf32>
    tpu.vector_store %arg2[%c0_2, %c0_3], %2 {strides = array<i32>} : memref<2x40xf32, #tpu.memory_space<vmem>>, vector<2x40xf32>,
    return
  }
  func.func @transform_0(%arg0: i32) -> (i32, i32, i32) {
    %c0_i32 = arith.constant 0 : i32
    %c0_i32_0 = arith.constant 0 : i32
    %c0_i32_1 = arith.constant 0 : i32
    return %c0_i32, %arg0, %c0_i32_0 : i32, i32, i32
  }
  func.func @transform_1(%arg0: i32) -> (i32, i32) {
    %c0_i32 = arith.constant 0 : i32
    %c0_i32_0 = arith.constant 0 : i32
    return %c0_i32, %arg0 : i32, i32
  }
}

</mosaic_0001>

<bundles_post_ra>
// kernel: tpu_custom_call.1
= control target key start
LH: loop header
LB: loop body
LE: loop exit
PB: predicated region body
PF: predicated region fallthrough
CT: control target
= control target key end

     0   :  { %6 = vsyncpa [#allocation3], 0  ;;  %s221_s0 = inlined_call_operand.hbm [shape: f32[2,40,128], index: 0, kind: input, shape index: {}]   ;;  %s222_s1 = inlined_call_operand.hbm [shape: f32[2,40], index: 1, kind: output, shape index: {}]  }
   0x1   :  { %7 = vsyncpa [#allocation4], 0  ;;  %s199_s6 = smov [#allocation2]  }
   0x2   :  { %s13_s7 = sshll.u32 %s199_s6, 4  ;;  %s14_s7 = int_to_ptr.vmem [resolvable:$true] %s13_s7 }
   0x3   :  { %s163_s8 = scalar_lea.vmem %s14_s7, 1280  ;;  %p168_p1 = scmp.lt.s32.totalorder %s14_s7, %s14_s7 }
   0x4   :  { %p164_p0 = scmp.ne.s32.totalorder %s14_s7, %s163_s8  ;;  %p169_p2 = scmp.lt.s32.totalorder %s163_s8, %s163_s8 }
   0x6   :  { %p170_p3 = por %p169_p2, %p168_p1 }
   0x8   :  { %p171_p4 = pnand %p170_p3, %p164_p0 }
   0xa   :  { %174 = shalt.err (!%p171_p4)
}
   0xb   :  { %s200_s9 = smov 128   ;;  %s201_s10 = smov 8  }
   0xc   :  { %19 = dma.hbm_to_vmem [thread:$0]  %s221_s0, 1280, %s14_s7, [#allocation3], %s200_s9, %s200_s9, %s201_s10  }
   0xd   :  { %195 = dma.done.wait [#allocation3], 1280  }
   0xe   :  { %196 = vsyncadd [#allocation3], 4294966016  ;;  %v28_v0 = vld [vmem:[#allocation2 + $0x28] sm:$0xff]  ;;  %v23_v1 = vld [vmem:[#allocation2] sm:$0xff]  ;;  %v73_v20 = vlaneseq  ;;  %vm84_vm0 = vcmask 130112   ;;  %vm91_vm1 = vcmask 195712  }
   0xf   :  { %v29_v2 = vld [vmem:[#allocation2 + $0x30] sm:$0xff]  ;;  %v38_v3 = vand.u32 2147483647, %v28_v0  ;;  %v33_v4 = vand.u32 2147483647, %v23_v1  ;;  %v24_v5 = vld [vmem:[#allocation2 + $0x8] sm:$0xff] }
  0x10   :  { %v39_v6 = vand.u32 2147483647, %v29_v2  ;;  %v34_v7 = vand.u32 2147483647, %v24_v5  ;;  %v30_v8 = vld [vmem:[#allocation2 + $0x38] sm:$0xff]  ;;  %v25_v9 = vld [vmem:[#allocation2 + $0x10] sm:$0xff] }
  0x11   :  { %53 = vmax.xlane.f32.xlu1 %v38_v3  ;;  %43 = vmax.xlane.f32.xlu0 %v33_v4  ;;  %v40_v10 = vand.u32 2147483647, %v30_v8  ;;  %v35_v11 = vand.u32 2147483647, %v25_v9  ;;  %v31_v12 = vld [vmem:[#allocation2 + $0x40] sm:$0xff]  ;;  %v26_v13 = vld [vmem:[#allocation2 + $0x18] sm:$0xff] }
  0x12   :  { %v41_v14 = vand.u32 2147483647, %v31_v12  ;;  %v36_v15 = vand.u32 2147483647, %v26_v13  ;;  %v32_v16 = vld [vmem:[#allocation2 + $0x48] sm:$0xff]  ;;  %v27_v17 = vld [vmem:[#allocation2 + $0x20] sm:$0xff] }
  0x13   :  { %v42_v18 = vand.u32 2147483647, %v32_v16  ;;  %v37_v19 = vand.u32 2147483647, %v27_v17  ;;  %v74_v23 = vand.u32 127, %v73_v20  ;;  %v76_v28 = vshrl.u32 %v73_v20, 7 }
  0x14   :  { %vm98_vm2 = vcmask 261312   ;;  %vm105_vm3 = vcmask 326912   ;;  %vm131_vm4 = vcmask 1041409   ;;  %s202_s0 = smov [#allocation5]   ;;  %vm134_vm5 = vcmask 320512  }
  0x15   :  { %55 = vmax.xlane.f32.xlu1 %v39_v6  ;;  %45 = vmax.xlane.f32.xlu0 %v34_v7  ;;  %v79_v24 = vadd.s32 4294967288, %v74_v23  ;;  %v86_v27 = vadd.s32 4294967280, %v74_v23  ;;  %v93_v29 = vadd.s32 4294967272, %v74_v23  ;;  %v100_v34 = vadd.s32 4294967264, %v74_v23  ;;  %s142_s13 = sshll.u32 %s202_s0, 4  ;;  %s143_s13 = int_to_ptr.vmem [resolvable:$true] %s142_s13 }
  0x16   :  { %v77_v35 = vsub.s32 %v74_v23, %v76_v28  ;;  %s175_s14 = scalar_lea.vmem %s143_s13, 32  ;;  %p180_p6 = scmp.lt.s32.totalorder %s143_s13, %s143_s13 }
  0x17   :  { %v82_v30 = vsub.s32 %v79_v24, %v76_v28  ;;  %v89_v33 = vsub.s32 %v86_v27, %v76_v28  ;;  %v96_v36 = vsub.s32 %v93_v29, %v76_v28  ;;  %v103_v43 = vsub.s32 %v100_v34, %v76_v28  ;;  %p176_p5 = scmp.ne.s32.totalorder %s143_s13, %s175_s14  ;;  %p181_p7 = scmp.lt.s32.totalorder %s175_s14, %s175_s14 }
  0x19   :  { %57 = vmax.xlane.f32.xlu1 %v40_v10  ;;  %47 = vmax.xlane.f32.xlu0 %v35_v11  ;;  %p182_p8 = por %p181_p7, %p180_p6 }
  0x1b   :  { %p183_p9 = pnand %p182_p8, %p176_p5 }
  0x1d   :  { %59 = vmax.xlane.f32.xlu1 %v41_v14  ;;  %49 = vmax.xlane.f32.xlu0 %v36_v15 }
  0x21   :  { %61 = vmax.xlane.f32.xlu1 %v42_v18  ;;  %51 = vmax.xlane.f32.xlu0 %v37_v19 }
  0x9a   :  { %v54_v21 = vpop.xlane.xlu1 %53  ;;  %v44_v22 = vpop.xlane.xlu0 %43 }
  0x9b   :  { %v110_v44 = vrot.slane %v54_v21, %v77_v35  ;;  %v78_v45 = vrot.slane %v44_v22, %v77_v35 }
  0x9e   :  { %v56_v25 = vpop.xlane.xlu1 %55  ;;  %v46_v26 = vpop.xlane.xlu0 %45 }
  0x9f   :  { %v114_v37 = vrot.slane %v56_v25, %v82_v30  ;;  %v83_v38 = vrot.slane %v46_v26, %v82_v30 }
  0xa1   :  { %v115_v48 = vsel %vm84_vm0, %v114_v37, %v110_v44  ;;  %v85_v49 = vsel %vm84_vm0, %v83_v38, %v78_v45 }
  0xa2   :  { %v58_v31 = vpop.xlane.xlu1 %57  ;;  %v48_v32 = vpop.xlane.xlu0 %47 }
  0xa3   :  { %v119_v41 = vrot.slane %v58_v31, %v89_v33  ;;  %v90_v42 = vrot.slane %v48_v32, %v89_v33 }
  0xa5   :  { %v120_v52 = vsel %vm91_vm1, %v119_v41, %v115_v48  ;;  %v92_v53 = vsel %vm91_vm1, %v90_v42, %v85_v49 }
  0xa6   :  { %v60_v39 = vpop.xlane.xlu1 %59  ;;  %v50_v40 = vpop.xlane.xlu0 %49 }
  0xa7   :  { %v124_v46 = vrot.slane %v60_v39, %v96_v36  ;;  %v97_v47 = vrot.slane %v50_v40, %v96_v36 }
  0xa9   :  { %v125_v56 = vsel %vm98_vm2, %v124_v46, %v120_v52  ;;  %v99_v57 = vsel %vm98_vm2, %v97_v47, %v92_v53 }
  0xaa   :  { %v62_v50 = vpop.xlane.xlu1 %61  ;;  %v52_v51 = vpop.xlane.xlu0 %51 }
  0xab   :  { %v129_v54 = vrot.slane %v62_v50, %v103_v43  ;;  %v104_v55 = vrot.slane %v52_v51, %v103_v43 }
  0xad   :  { %v130_v58 = vsel %vm105_vm3, %v129_v54, %v125_v56  ;;  %v106_v59 = vsel %vm105_vm3, %v104_v55, %v99_v57 }
  0xae   :  { %v132_v60 = vsel %vm131_vm4, %v130_v58, %v106_v59 }
  0xaf   :  { %135 = vst.msk [vmem:[#allocation5] sm:$0x3] %vm134_vm5, %v132_v60 }
  0xb0   :  { %186 = shalt.err (!%p183_p9)
}
  0xb1   :  { %145 = dma.vmem_to_hbm [thread:$0]  %s143_s13, 32, %s222_s1, [#allocation4]  }
  0xb2   :  { %197 = dma.done.wait [#allocation4], 32  }
  0xb3   :  { %198 = vsyncadd [#allocation4], 4294967264 }
  0xb4   :  { %149 = vsyncpa [#allocation3], 1 }
  0xb5   :  { %150 = vsyncpa [#allocation4], 1 }

</bundles_post_ra>
